<compile_context>
chip_gen: v5e
topology: v5e:2x2
jax: 0.10.0
libtpu: 0.0.40
codegen_flags: <defaults>
</compile_context>

<pallas_src>
import functools

import jax
import jax.numpy as jnp
import numpy as np
from jax.experimental import pallas as pl
from jax.experimental.pallas import tpu as pltpu


def _round_up(x, m):
    return (x + m - 1) // m * m


def conv_gemm_kernel(w_ref, b_ref, p_ref, o_ref):
    # w_ref: (Cout, K)   K = Cin*KH*KW, im2col-folded weight
    # b_ref: (Cout, 1)   bias
    # p_ref: (K, Lp)     im2col patches, Lp = round_up(N*H*W, 128) lanes
    # o_ref: (Cout, Lp)  conv output, lane-dense
    acc = jnp.dot(w_ref[...], p_ref[...], preferred_element_type=jnp.float32)
    o_ref[...] = (acc + b_ref[...]).astype(o_ref.dtype)


@jax.jit
def spectral_norm_conv2d_forward(x, weight, bias):
    """Forward of SpectralNorm(Conv2d) == the conv itself.

    x: [N, Cin, H, W] (NCHW). weight: [Cout, Cin, KH, KW]. bias: [Cout].
    """
    N, Cin, H, W = x.shape
    Cout, _, KH, KW = weight.shape
    ph, pw = KH // 2, KW // 2            # PyTorch padding=1 for odd kernels

    K = Cin * KH * KW                    # 36
    L = N * H * W                        # 512 output lanes
    Lp = _round_up(L, 128)               # lane-dense (already 512 here)

    # --- wrapper glue (tiny, fused under jit): im2col patches (K, L) ---
    xp = jnp.pad(x, ((0, 0), (0, 0), (ph, ph), (pw, pw)))     # (N,Cin,Hp,Wp)
    # K-axis order must match weight.reshape(Cout, Cin*KH*KW): (Cin, KH, KW)
    taps = [xp[:, :, kh:kh + H, kw:kw + W]
            for kh in range(KH) for kw in range(KW)]           # each (N,Cin,H,W)
    patches = jnp.stack(taps, axis=2)                          # (N,Cin,KH*KW,H,W)
    patches = jnp.transpose(patches, (1, 2, 0, 3, 4)).reshape(K, L)
    if Lp != L:
        patches = jnp.pad(patches, ((0, 0), (0, Lp - L)))

    w_mat = weight.reshape(Cout, K)                            # (8, 36)
    b_mat = bias.reshape(Cout, 1)

    flops = 2 * Cout * K * L
    bytes_accessed = 4 * (w_mat.size + b_mat.size + K * Lp + Cout * Lp)

    out_flat = pl.pallas_call(
        conv_gemm_kernel,
        out_shape=jax.ShapeDtypeStruct((Cout, Lp), x.dtype),
        grid_spec=pltpu.PrefetchScalarGridSpec(
            num_scalar_prefetch=0,
            grid=(1,),                                  # one wide GEMM step
            in_specs=[
                pl.BlockSpec((Cout, K), lambda i: (0, 0)),
                pl.BlockSpec((Cout, 1), lambda i: (0, 0)),
                pl.BlockSpec((K, Lp), lambda i: (0, 0)),
            ],
            out_specs=pl.BlockSpec((Cout, Lp), lambda i: (0, 0)),
        ),
        compiler_params=pltpu.CompilerParams(
            dimension_semantics=("arbitrary",),
        ),
        cost_estimate=pl.CostEstimate(
            flops=flops, transcendentals=0, bytes_accessed=bytes_accessed),
    )(w_mat, b_mat, patches)

    # --- wrapper glue (fused under jit): back to NCHW ---
    out = out_flat[:, :L].reshape(Cout, N, H, W)
    return jnp.transpose(out, (1, 0, 2, 3))                    # (N, Cout, H, W)


if __name__ == "__main__":
    # Wrapped module: Conv2d(in_channels=4, out_channels=8, kernel_size=3, padding=1)
    N, Cin, H, W = 2, 4, 16, 16
    Cout, KH, KW = 8, 3, 3

    key = jax.random.PRNGKey(0)
    k_w, k_b, k_x, k_u, k_v = jax.random.split(key, 5)

    # deterministic parameter init (synthetic; not a checkpoint load)
    fan_in = Cin * KH * KW
    bound = 1.0 / np.sqrt(fan_in)
    weight = jax.random.uniform(k_w, (Cout, Cin, KH, KW), jnp.float32, -bound, bound)
    bias = jax.random.uniform(k_b, (Cout,), jnp.float32, -bound, bound)

    # SpectralNorm buffers (height = Cout, width = Cin*KH*KW) — created but
    # unused in the forward pass, exactly as in the reference implementation.
    weight_u = jax.random.normal(k_u, (Cout,), jnp.float32)
    weight_v = jax.random.normal(k_v, (Cin * KH * KW,), jnp.float32)

    x = jax.random.normal(k_x, (N, Cin, H, W), jnp.float32)

    y = spectral_norm_conv2d_forward(x, weight, bias)
    y = jax.block_until_ready(y)

    # silent correctness check vs. pure-JAX reference conv (NCHW, padding=1)
    y_ref = jax.lax.conv_general_dilated(
        x, weight, window_strides=(1, 1), padding="SAME",
        dimension_numbers=("NCHW", "OIHW", "NCHW"),
    ) + bias.reshape(1, Cout, 1, 1)
    np.testing.assert_allclose(np.asarray(y), np.asarray(y_ref), rtol=1e-4, atol=1e-4)

    print("KERNEL_OK")
</pallas_src>

<mosaic_0001>
module attributes {stable_mosaic.version = 11 : i64} {
  func.func @conv_gemm_kernel(%arg0: i32, %arg1: memref<8x36xf32, #tpu.memory_space<vmem>>, %arg2: memref<8x1xf32, #tpu.memory_space<vmem>>, %arg3: memref<36x512xf32, #tpu.memory_space<vmem>>, %arg4: memref<8x512xf32, #tpu.memory_space<vmem>>) attributes {dimension_semantics = [#tpu.dimension_semantics<arbitrary>], iteration_bounds = array<i64: 1>, scalar_prefetch = 0 : i64, scratch_operands = 0 : i64, tpu.core_type = #tpu.core_type<tc>, window_params = [{pipeline_mode = #tpu.pipeline_mode<synchronous>, transform_indices = @transform_0, window_bounds = array<i64: 8, 36>}, {pipeline_mode = #tpu.pipeline_mode<synchronous>, transform_indices = @transform_1, window_bounds = array<i64: 8, 1>}, {pipeline_mode = #tpu.pipeline_mode<synchronous>, transform_indices = @transform_2, window_bounds = array<i64: 36, 512>}, {pipeline_mode = #tpu.pipeline_mode<synchronous>, transform_indices = @transform_3, window_bounds = array<i64: 8, 512>}]} {
    %c0 = arith.constant 0 : index
    %c0_0 = arith.constant 0 : index
    %0 = vector.load %arg1[%c0, %c0_0] : memref<8x36xf32, #tpu.memory_space<vmem>>, vector<8x36xf32>
    %c0_1 = arith.constant 0 : index
    %c0_2 = arith.constant 0 : index
    %1 = vector.load %arg3[%c0_1, %c0_2] : memref<36x512xf32, #tpu.memory_space<vmem>>, vector<36x512xf32>
    %cst = arith.constant dense<0.000000e+00> : vector<8x512xf32>
    %2 = tpu.matmul %0, %1, %cst {dimension_numbers = #tpu.dot_dimension_numbers<[1], [0], [0], [1], [0, 0, 1, 1], [], []>} : vector<8x36xf32>, vector<36x512xf32>, vector<8x512xf32> -> vector<8x512xf32>
    %c0_3 = arith.constant 0 : index
    %c0_4 = arith.constant 0 : index
    %3 = vector.load %arg2[%c0_3, %c0_4] : memref<8x1xf32, #tpu.memory_space<vmem>>, vector<8x1xf32>
    %4 = vector.broadcast %3 : vector<8x1xf32> to vector<8x512xf32>
    %5 = arith.addf %2, %4 : vector<8x512xf32>
    %c0_5 = arith.constant 0 : index
    %c0_6 = arith.constant 0 : index
    %6 = vector.load %arg4[%c0_5, %c0_6] : memref<8x512xf32, #tpu.memory_space<vmem>>, vector<8x512xf32>
    tpu.vector_store %arg4[%c0_5, %c0_6], %5 {strides = array<i32>} : memref<8x512xf32, #tpu.memory_space<vmem>>, vector<8x512xf32>,
    return
  }
  func.func @transform_0(%arg0: i32) -> (i32, i32) {
    %c0_i32 = arith.constant 0 : i32
    %c0_i32_0 = arith.constant 0 : i32
    %c0_i32_1 = arith.constant 0 : i32
    return %c0_i32, %c0_i32_0 : i32, i32
  }
  func.func @transform_1(%arg0: i32) -> (i32, i32) {
    %c0_i32 = arith.constant 0 : i32
    %c0_i32_0 = arith.constant 0 : i32
    %c0_i32_1 = arith.constant 0 : i32
    return %c0_i32, %c0_i32_0 : i32, i32
  }
  func.func @transform_2(%arg0: i32) -> (i32, i32) {
    %c0_i32 = arith.constant 0 : i32
    %c0_i32_0 = arith.constant 0 : i32
    %c0_i32_1 = arith.constant 0 : i32
    return %c0_i32, %c0_i32_0 : i32, i32
  }
  func.func @transform_3(%arg0: i32) -> (i32, i32) {
    %c0_i32 = arith.constant 0 : i32
    %c0_i32_0 = arith.constant 0 : i32
    %c0_i32_1 = arith.constant 0 : i32
    return %c0_i32, %c0_i32_0 : i32, i32
  }
}

</mosaic_0001>

<bundles_post_ra>
// kernel: spectral_norm_conv2d_forward.1
= control target key start
LH: loop header
LB: loop body
LE: loop exit
PB: predicated region body
PF: predicated region fallthrough
CT: control target
= control target key end

     0   :  { %vm45_vm0 = vcmask 1043456   ;;  %v156_v3 = vmov 0   ;;  %vm41_vm1 = vcmask 293888   ;;  %s263_s2 = inlined_call_operand.vmem [shape: f32[36,512], index: 2, kind: input, shape index: {}]   ;;  %s264_s0 = inlined_call_operand.vmem [shape: f32[8,36], index: 0, kind: input, shape index: {}]   ;;  %s265_s1 = inlined_call_operand.vmem [shape: f32[8,1], index: 1, kind: input, shape index: {}]   ;;  %s266_s3 = inlined_call_operand.vmem [shape: f32[8,512], index: 3, kind: output, shape index: {}]  }
   0x1   :  { %v33_v0 = vld [vmem:[%s263_s2 + $0x90] sm:$0xf]  ;;  %v34_v1 = vld [vmem:[%s263_s2 + $0x98] sm:$0xf]  ;;  %155 = vset.pattern.permute.xlu0 %v156_v3  ;;  %v31_v7 = vld [vmem:[%s263_s2 + $0x80] sm:$0xf] }
   0x2   :  { %v29_v2 = vld [vmem:[%s263_s2 + $0x70] sm:$0xff]  ;;  %150 = vmatpush.msk.msra.mxu2 %vm45_vm0, %v33_v0  ;;  %152 = vmatpush.msk.msra.mxu3 %vm45_vm0, %v34_v1  ;;  %v30_v4 = vld [vmem:[%s263_s2 + $0x78] sm:$0xff]  ;;  %v32_v8 = vld [vmem:[%s263_s2 + $0x88] sm:$0xf] }
   0x3   :  { %v25_v5 = vld [vmem:[%s263_s2 + $0x50] sm:$0xff]  ;;  %v26_v6 = vld [vmem:[%s263_s2 + $0x58] sm:$0xff]  ;;  %v27_v9 = vld [vmem:[%s263_s2 + $0x60] sm:$0xff]  ;;  %146 = vmatpush.msk.msra.mxu0 %vm45_vm0, %v31_v7  ;;  %148 = vmatpush.msk.msra.mxu1 %vm45_vm0, %v32_v8 }
   0x4   :  { %110 = vmatpush.msra.mxu2 %v29_v2  ;;  %130 = vmatpush.msra.mxu3 %v30_v4  ;;  %v28_v10 = vld [vmem:[%s263_s2 + $0x68] sm:$0xff]  ;;  %v21_v11 = vld [vmem:[%s263_s2 + $0x30] sm:$0xff]  ;;  %v22_v12 = vld [vmem:[%s263_s2 + $0x38] sm:$0xff] }
   0x5   :  { %v23_v13 = vld [vmem:[%s263_s2 + $0x40] sm:$0xff]  ;;  %v24_v14 = vld [vmem:[%s263_s2 + $0x48] sm:$0xff]  ;;  %70 = vmatpush.msra.mxu0 %v27_v9  ;;  %90 = vmatpush.msra.mxu1 %v28_v10  ;;  %v17_v15 = vld [vmem:[%s263_s2 + $0x10] sm:$0xff] }
   0x6   :  { %111 = vmatpush.msra.mxu2 %v25_v5  ;;  %131 = vmatpush.msra.mxu3 %v26_v6  ;;  %v18_v16 = vld [vmem:[%s263_s2 + $0x18] sm:$0xff]  ;;  %v14_v17 = vld [vmem:[%s264_s0] sm:$0xff]  ;;  %v20_v19 = vld [vmem:[%s263_s2 + $0x28] sm:$0xff] }
   0x7   :  { %71 = vmatpush.msra.mxu0 %v23_v13  ;;  %91 = vmatpush.msra.mxu1 %v24_v14  ;;  %v19_v18 = vld [vmem:[%s263_s2 + $0x20] sm:$0xff]  ;;  %v16_v22 = vld [vmem:[%s263_s2 + $0x8] sm:$0xff] }
   0x8   :  { %112 = vmatpush.msra.mxu2 %v21_v11  ;;  %132 = vmatpush.msra.mxu3 %v22_v12  ;;  %v35_v20 = vld [vmem:[%s265_s1] sm:$0xff] }
   0x9   :  { %v15_v21 = vld [vmem:[%s263_s2] sm:$0xff]  ;;  %72 = vmatpush.msra.mxu0 %v19_v18  ;;  %92 = vmatpush.msra.mxu1 %v20_v19 }
   0xa   :  { %113 = vmatpush.msra.mxu2 %v17_v15  ;;  %133 = vmatpush.msra.mxu3 %v18_v16 }
   0xb   :  { %151 = vmatmul.msk.f32.vlgmr.msra.gmra.mxu2 %vm41_vm1, %v14_v17  ;;  %153 = vmatmul.msk.f32.vlgmr.msra.gmra.mxu3 %vm41_vm1, %v14_v17 }
   0xc   :  { %38 = vperm.xlu0 %155, %v35_v20   ;;  %73 = vmatpush.msra.mxu0 %v15_v21 }
   0xd   :  { %93 = vmatpush.msra.mxu1 %v16_v22  ;;  %147 = vmatmul.msk.f32.vlgmr.msra.gmra.mxu0 %vm41_vm1, %v14_v17 }
   0xe   :  { %149 = vmatmul.msk.f32.vlgmr.msra.gmra.mxu1 %vm41_vm1, %v14_v17 }
  0x7e   :  { %v39_v23 = vpop.permute.xlu0 %38 }
  0x8a   :  { %v75_v24 = vpop.f32.mrf.mxu0 }
  0x8b   :  { %v95_v25 = vpop.f32.mrf.mxu1  ;;  %v76_v26 = vadd.f32 %v75_v24, %v39_v23 }
  0x8c   :  { %v96_v27 = vadd.f32 %v95_v25, %v39_v23 }
  0x8d   :  { %138 = vst [vmem:[%s266_s3] sm:$0xff] %v76_v26 }
  0x8e   :  { %v115_v28 = vpop.f32.mrf.mxu2  ;;  %v135_v29 = vpop.f32.mrf.mxu3  ;;  %139 = vst [vmem:[%s266_s3 + $0x8] sm:$0xff] %v96_v27 }
  0x8f   :  { %v116_v30 = vadd.f32 %v115_v28, %v39_v23  ;;  %v136_v31 = vadd.f32 %v135_v29, %v39_v23 }
  0x91   :  { %140 = vst [vmem:[%s266_s3 + $0x10] sm:$0xff] %v116_v30 }
  0x92   :  { %141 = vst [vmem:[%s266_s3 + $0x18] sm:$0xff] %v136_v31 }

</bundles_post_ra>
